<compile_context>
chip_gen: v5e
topology: v5e:2x2
jax: 0.10.0
libtpu: 0.0.40
codegen_flags: <defaults>
</compile_context>

<pallas_src>
import functools

import jax
import jax.numpy as jnp
from jax.experimental import pallas as pl
from jax.experimental.pallas import tpu as pltpu


# ----------------------------------------------------------------------------
# Fused kernel: per grid step b (one batch element)
#   q_emb   = mean_pool(q_tokens[b]) @ w_query              (MXU)
#   p_emb   = mean_pool(p_tokens[b]) @ w_psg                (MXU)
#   scaled  = q_emb * p_emb                                  (query scaling)
#   dist    = sqrt(max(||xi||^2 + ||xj||^2 - 2 xi.xj, 0))    (Gram trick, MXU)
#   accumulate sim/dist/err sums across the grid; finalize at b==B-1.
# ----------------------------------------------------------------------------
def _fused_bbcluster_kernel(q_tok_ref, p_tok_ref, adj_ref, wq_ref, wp_ref,
                            o_ref, acc_ref, *, reg, batch, n, s_q, s_p):
    b = pl.program_id(0)

    @pl.when(b == 0)
    def _init():
        for i in range(4):
            acc_ref[i] = jnp.float32(0.0)

    # --- sentence-transformer stand-in: mean-pool tokens + dense projection ---
    q_pooled = jnp.sum(q_tok_ref[0], axis=0, keepdims=True) * jnp.float32(1.0 / s_q)  # (1, H)
    p_pooled = jnp.sum(p_tok_ref[0], axis=1) * jnp.float32(1.0 / s_p)                 # (N, H)

    q_emb = jnp.dot(q_pooled, wq_ref[...], preferred_element_type=jnp.float32)  # (1, D)
    p_emb = jnp.dot(p_pooled, wp_ref[...], preferred_element_type=jnp.float32)  # (N, D)

    # query-scaled passage embeddings (torch.tile(query, (1,n,1)) * psg)
    scaled = q_emb * p_emb                                                       # (N, D)

    # --- pairwise euclidean distances via Gram identity on the MXU ---
    gram = jax.lax.dot_general(
        scaled, scaled,
        dimension_numbers=(((1,), (1,)), ((), ())),
        preferred_element_type=jnp.float32)                                      # (N, N)
    sq = jnp.sum(scaled * scaled, axis=-1, keepdims=True)                        # (N, 1)
    half = sq - gram                                                             # (N, N)
    d2 = jnp.maximum(half + half.T, 0.0)        # clamp fp-cancellation negatives
    row_ids = jax.lax.broadcasted_iota(jnp.int32, (n, n), 0)
    col_ids = jax.lax.broadcasted_iota(jnp.int32, (n, n), 1)
    d2 = jnp.where(row_ids == col_ids, 0.0, d2)  # exact 0 diag (matches torch)
    dist = jnp.sqrt(d2)                                                          # (N, N)

    adj = adj_ref[0]                                                             # (N, N)

    sum_adj = jnp.sum(adj)
    sum_dist = jnp.sum(dist)
    sum_dist_adj = jnp.sum(dist * adj)

    acc_ref[0] = acc_ref[0] + sum_dist_adj   # similar numerator
    acc_ref[1] = acc_ref[1] + sum_adj        # similar denominator
    acc_ref[2] = acc_ref[2] + sum_dist       # total dist (dissim num derived)

    # TODO(synk): OptimCluster.apply is a blackbox combinatorial clustering
    # solver (agglomerative clustering with k clusters + lambda perturbation);
    # no Pallas equivalent — deterministic mean-distance-threshold adjacency
    # used as a stand-in for the predicted adjacency matrix.
    thr = sum_dist * jnp.float32(1.0 / (n * n))
    adj_pred = (dist <= thr).astype(jnp.float32)
    not_adj = 1.0 - adj
    err = adj_pred * not_adj + (1.0 - adj_pred) * adj
    acc_ref[3] = acc_ref[3] + jnp.sum(err)

    @pl.when(b == batch - 1)
    def _finalize():
        eps = jnp.float32(1e-12)  # guard degenerate all-same / all-diff labels
        total_pairs = jnp.float32(batch * n * n)
        mean_sim = acc_ref[0] / jnp.maximum(acc_ref[1], eps)
        mean_dis = (acc_ref[2] - acc_ref[0]) / jnp.maximum(
            total_pairs - acc_ref[1], eps)
        err_mean = acc_ref[3] * jnp.float32(1.0 / batch)   # mean(dim=0).sum()
        o_ref[0, 0] = err_mean + jnp.float32(reg) * (mean_sim - mean_dis)


def bb_cluster_loss_forward(query_tokens, passage_tokens, labels,
                            w_query, w_psg, lambda_val, reg_const):
    """query_tokens: (B, Sq, H), passage_tokens: (B, N, Sp, H), labels: (B, N)."""
    B, N, Sp, H = passage_tokens.shape
    Sq = query_tokens.shape[1]
    D = w_query.shape[1]
    del lambda_val  # consumed only by the blackbox OptimCluster solver

    # true adjacency: adj[b,i,j] = 1 if i==j or labels[b,i]==labels[b,j]
    # (diagonal implied since a label equals itself) — cheap host-side glue.
    true_adj = (labels[:, :, None] == labels[:, None, :]).astype(jnp.float32)

    kernel = functools.partial(
        _fused_bbcluster_kernel,
        reg=float(reg_const), batch=int(B), n=int(N), s_q=int(Sq), s_p=int(Sp))

    grid_spec = pltpu.PrefetchScalarGridSpec(
        num_scalar_prefetch=0,
        grid=(B,),
        in_specs=[
            pl.BlockSpec((1, Sq, H), lambda b: (b, 0, 0)),        # query tokens
            pl.BlockSpec((1, N, Sp, H), lambda b: (b, 0, 0, 0)),  # passage tokens
            pl.BlockSpec((1, N, N), lambda b: (b, 0, 0)),         # true adjacency
            pl.BlockSpec((H, D), lambda b: (0, 0)),               # w_query (resident)
            pl.BlockSpec((H, D), lambda b: (0, 0)),               # w_psg   (resident)
        ],
        out_specs=pl.BlockSpec((1, 1), lambda b: (0, 0),
                               memory_space=pltpu.MemorySpace.SMEM),
        scratch_shapes=[pltpu.SMEM((4,), jnp.float32)],           # 4 accumulators
    )

    out = pl.pallas_call(
        kernel,
        out_shape=jax.ShapeDtypeStruct((1, 1), jnp.float32),
        grid_spec=grid_spec,
        compiler_params=pltpu.CompilerParams(
            dimension_semantics=("arbitrary",)),   # batch axis is a reduction
    )(query_tokens, passage_tokens, true_adj, w_query, w_psg)
    return out[0, 0]


if __name__ == "__main__":
    # small, lane-dense demo shapes: H = D = 128 fill the lane axis of every vreg.
    B, N, S, H, D = 2, 16, 8, 128, 128
    lambda_val = 5.0
    reg_const = 0.1

    key = jax.random.PRNGKey(0)
    k1, k2, k3, k4 = jax.random.split(key, 4)

    query_tokens = jax.random.normal(k1, (B, S, H), dtype=jnp.float32)
    passage_tokens = jax.random.normal(k2, (B, N, S, H), dtype=jnp.float32)
    labels = jnp.array(
        [[0, 0, 0, 0, 1, 1, 1, 1, 2, 2, 2, 2, 3, 3, 3, 3],
         [0, 1, 0, 1, 0, 1, 0, 1, 0, 1, 0, 1, 0, 1, 0, 1]], dtype=jnp.int32)

    # deterministic synthetic encoder weights
    w_query = jax.random.normal(k3, (H, D), dtype=jnp.float32) / jnp.sqrt(jnp.float32(H))
    w_psg = jax.random.normal(k4, (H, D), dtype=jnp.float32) / jnp.sqrt(jnp.float32(H))

    loss = bb_cluster_loss_forward(query_tokens, passage_tokens, labels,
                                   w_query, w_psg, lambda_val, reg_const)
    jax.block_until_ready(loss)
    print("KERNEL_OK")
</pallas_src>

<mosaic_0001>
module attributes {stable_mosaic.version = 11 : i64} {
  func.func @_fused_bbcluster_kernel(%arg0: i32, %arg1: memref<1x8x128xf32, #tpu.memory_space<vmem>>, %arg2: memref<1x16x8x128xf32, #tpu.memory_space<vmem>>, %arg3: memref<1x16x16xf32, #tpu.memory_space<vmem>>, %arg4: memref<128x128xf32, #tpu.memory_space<vmem>>, %arg5: memref<128x128xf32, #tpu.memory_space<vmem>>, %arg6: memref<1x1xf32, #tpu.memory_space<smem>>, %arg7: memref<4xf32, #tpu.memory_space<smem>>) attributes {dimension_semantics = [#tpu.dimension_semantics<arbitrary>], iteration_bounds = array<i64: 2>, scalar_prefetch = 0 : i64, scratch_operands = 1 : i64, tpu.core_type = #tpu.core_type<tc>, window_params = [{transform_indices = @transform_0, window_bounds = array<i64: 1, 8, 128>}, {transform_indices = @transform_1, window_bounds = array<i64: 1, 16, 8, 128>}, {transform_indices = @transform_2, window_bounds = array<i64: 1, 16, 16>}, {pipeline_mode = #tpu.pipeline_mode<synchronous>, transform_indices = @transform_3, window_bounds = array<i64: 128, 128>}, {pipeline_mode = #tpu.pipeline_mode<synchronous>, transform_indices = @transform_4, window_bounds = array<i64: 128, 128>}, {transform_indices = @transform_5, window_bounds = array<i64: 1, 1>}]} {
    %c0_i32 = arith.constant 0 : i32
    %0 = arith.cmpi eq, %arg0, %c0_i32 : i32
    %1 = arith.extui %0 : i1 to i32
    %c0_i32_0 = arith.constant 0 : i32
    %2 = arith.cmpi ne, %1, %c0_i32_0 : i32
    scf.if %2 {
      %cst_36 = arith.constant 0.000000e+00 : f32
      %c0_37 = arith.constant 0 : index
      %82 = memref.load %arg7[%c0_37] : memref<4xf32, #tpu.memory_space<smem>>
      memref.store %cst_36, %arg7[%c0_37] : memref<4xf32, #tpu.memory_space<smem>>
      %cst_38 = arith.constant 0.000000e+00 : f32
      %c1_39 = arith.constant 1 : index
      %83 = memref.load %arg7[%c1_39] : memref<4xf32, #tpu.memory_space<smem>>
      memref.store %cst_38, %arg7[%c1_39] : memref<4xf32, #tpu.memory_space<smem>>
      %cst_40 = arith.constant 0.000000e+00 : f32
      %c2_41 = arith.constant 2 : index
      %84 = memref.load %arg7[%c2_41] : memref<4xf32, #tpu.memory_space<smem>>
      memref.store %cst_40, %arg7[%c2_41] : memref<4xf32, #tpu.memory_space<smem>>
      %cst_42 = arith.constant 0.000000e+00 : f32
      %c3_43 = arith.constant 3 : index
      %85 = memref.load %arg7[%c3_43] : memref<4xf32, #tpu.memory_space<smem>>
      memref.store %cst_42, %arg7[%c3_43] : memref<4xf32, #tpu.memory_space<smem>>
    } else {
    }
    %c0 = arith.constant 0 : index
    %c0_1 = arith.constant 0 : index
    %c0_2 = arith.constant 0 : index
    %3 = vector.load %arg1[%c0, %c0_1, %c0_2] : memref<1x8x128xf32, #tpu.memory_space<vmem>>, vector<1x8x128xf32>
    %4 = vector.shape_cast %3 : vector<1x8x128xf32> to vector<8x128xf32>
    %cst = arith.constant dense<0.000000e+00> : vector<128xf32>
    %5 = vector.multi_reduction <add>, %4, %cst [0] : vector<8x128xf32> to vector<128xf32>
    %6 = vector.shape_cast %5 : vector<128xf32> to vector<1x128xf32>
    %cst_3 = arith.constant 1.250000e-01 : f32
    %7 = vector.broadcast %cst_3 : f32 to vector<1x128xf32>
    %8 = arith.mulf %6, %7 : vector<1x128xf32>
    %c0_4 = arith.constant 0 : index
    %c0_5 = arith.constant 0 : index
    %c0_6 = arith.constant 0 : index
    %c0_7 = arith.constant 0 : index
    %9 = vector.load %arg2[%c0_4, %c0_5, %c0_6, %c0_7] : memref<1x16x8x128xf32, #tpu.memory_space<vmem>>, vector<1x16x8x128xf32>
    %10 = vector.shape_cast %9 : vector<1x16x8x128xf32> to vector<16x8x128xf32>
    %cst_8 = arith.constant dense<0.000000e+00> : vector<16x128xf32>
    %11 = vector.multi_reduction <add>, %10, %cst_8 [1] : vector<16x8x128xf32> to vector<16x128xf32>
    %cst_9 = arith.constant 1.250000e-01 : f32
    %12 = vector.broadcast %cst_9 : f32 to vector<16x128xf32>
    %13 = arith.mulf %11, %12 : vector<16x128xf32>
    %c0_10 = arith.constant 0 : index
    %c0_11 = arith.constant 0 : index
    %14 = vector.load %arg4[%c0_10, %c0_11] : memref<128x128xf32, #tpu.memory_space<vmem>>, vector<128x128xf32>
    %cst_12 = arith.constant dense<0.000000e+00> : vector<1x128xf32>
    %15 = tpu.matmul %8, %14, %cst_12 {dimension_numbers = #tpu.dot_dimension_numbers<[1], [0], [0], [1], [0, 0, 1, 1], [], []>} : vector<1x128xf32>, vector<128x128xf32>, vector<1x128xf32> -> vector<1x128xf32>
    %c0_13 = arith.constant 0 : index
    %c0_14 = arith.constant 0 : index
    %16 = vector.load %arg5[%c0_13, %c0_14] : memref<128x128xf32, #tpu.memory_space<vmem>>, vector<128x128xf32>
    %cst_15 = arith.constant dense<0.000000e+00> : vector<16x128xf32>
    %17 = tpu.matmul %13, %16, %cst_15 {dimension_numbers = #tpu.dot_dimension_numbers<[1], [0], [0], [1], [0, 0, 1, 1], [], []>} : vector<16x128xf32>, vector<128x128xf32>, vector<16x128xf32> -> vector<16x128xf32>
    %18 = vector.broadcast %15 : vector<1x128xf32> to vector<16x128xf32>
    %19 = arith.mulf %18, %17 : vector<16x128xf32>
    %cst_16 = arith.constant dense<0.000000e+00> : vector<16x16xf32>
    %20 = tpu.matmul %19, %19, %cst_16 {dimension_numbers = #tpu.dot_dimension_numbers<[1], [1], [0], [0], [0, 0, 1, 0], [], []>} : vector<16x128xf32>, vector<16x128xf32>, vector<16x16xf32> -> vector<16x16xf32>
    %21 = arith.mulf %19, %19 : vector<16x128xf32>
    %cst_17 = arith.constant dense<0.000000e+00> : vector<16xf32>
    %22 = vector.multi_reduction <add>, %21, %cst_17 [1] : vector<16x128xf32> to vector<16xf32>
    %23 = vector.shape_cast %22 : vector<16xf32> to vector<16x1xf32>
    %24 = vector.broadcast %23 : vector<16x1xf32> to vector<16x16xf32>
    %25 = arith.subf %24, %20 : vector<16x16xf32>
    %26 = tpu.transpose %25, [1, 0] : vector<16x16xf32> -> vector<16x16xf32>
    %27 = arith.addf %25, %26 : vector<16x16xf32>
    %cst_18 = arith.constant 0.000000e+00 : f32
    %28 = vector.broadcast %cst_18 : f32 to vector<16x16xf32>
    %29 = arith.maximumf %27, %28 : vector<16x16xf32>
    %30 = tpu.iota {dimensions = array<i32: 0>} : vector<16x16xi32>
    %31 = tpu.iota {dimensions = array<i32: 1>} : vector<16x16xi32>
    %32 = arith.cmpi eq, %30, %31 : vector<16x16xi32>
    %cst_19 = arith.constant 0.000000e+00 : f32
    %33 = vector.broadcast %cst_19 : f32 to vector<16x16xf32>
    %34 = arith.select %32, %33, %29 : vector<16x16xi1>, vector<16x16xf32>
    %35 = math.sqrt %34 : vector<16x16xf32>
    %c0_20 = arith.constant 0 : index
    %c0_21 = arith.constant 0 : index
    %c0_22 = arith.constant 0 : index
    %36 = vector.load %arg3[%c0_20, %c0_21, %c0_22] : memref<1x16x16xf32, #tpu.memory_space<vmem>>, vector<1x16x16xf32>
    %37 = vector.shape_cast %36 : vector<1x16x16xf32> to vector<16x16xf32>
    %38 = vector.shape_cast %37 : vector<16x16xf32> to vector<1x16x16xf32>
    %cst_23 = arith.constant dense<0.000000e+00> : vector<1xf32>
    %39 = vector.multi_reduction <add>, %38, %cst_23 [1, 2] : vector<1x16x16xf32> to vector<1xf32>
    %40 = vector.shape_cast %39 : vector<1xf32> to vector<1x1x1xf32>
    %41 = vector.extract %40[0, 0, 0] : f32 from vector<1x1x1xf32>
    %42 = vector.shape_cast %35 : vector<16x16xf32> to vector<1x16x16xf32>
    %cst_24 = arith.constant dense<0.000000e+00> : vector<1xf32>
    %43 = vector.multi_reduction <add>, %42, %cst_24 [1, 2] : vector<1x16x16xf32> to vector<1xf32>
    %44 = vector.shape_cast %43 : vector<1xf32> to vector<1x1x1xf32>
    %45 = vector.extract %44[0, 0, 0] : f32 from vector<1x1x1xf32>
    %46 = arith.mulf %35, %37 : vector<16x16xf32>
    %47 = vector.shape_cast %46 : vector<16x16xf32> to vector<1x16x16xf32>
    %cst_25 = arith.constant dense<0.000000e+00> : vector<1xf32>
    %48 = vector.multi_reduction <add>, %47, %cst_25 [1, 2] : vector<1x16x16xf32> to vector<1xf32>
    %49 = vector.shape_cast %48 : vector<1xf32> to vector<1x1x1xf32>
    %50 = vector.extract %49[0, 0, 0] : f32 from vector<1x1x1xf32>
    %c0_26 = arith.constant 0 : index
    %51 = memref.load %arg7[%c0_26] : memref<4xf32, #tpu.memory_space<smem>>
    %52 = arith.addf %51, %50 : f32
    %c0_27 = arith.constant 0 : index
    %53 = memref.load %arg7[%c0_27] : memref<4xf32, #tpu.memory_space<smem>>
    memref.store %52, %arg7[%c0_27] : memref<4xf32, #tpu.memory_space<smem>>
    %c1 = arith.constant 1 : index
    %54 = memref.load %arg7[%c1] : memref<4xf32, #tpu.memory_space<smem>>
    %55 = arith.addf %54, %41 : f32
    %c1_28 = arith.constant 1 : index
    %56 = memref.load %arg7[%c1_28] : memref<4xf32, #tpu.memory_space<smem>>
    memref.store %55, %arg7[%c1_28] : memref<4xf32, #tpu.memory_space<smem>>
    %c2 = arith.constant 2 : index
    %57 = memref.load %arg7[%c2] : memref<4xf32, #tpu.memory_space<smem>>
    %58 = arith.addf %57, %45 : f32
    %c2_29 = arith.constant 2 : index
    %59 = memref.load %arg7[%c2_29] : memref<4xf32, #tpu.memory_space<smem>>
    memref.store %58, %arg7[%c2_29] : memref<4xf32, #tpu.memory_space<smem>>
    %cst_30 = arith.constant 3.906250e-03 : f32
    %60 = arith.mulf %45, %cst_30 : f32
    %61 = vector.broadcast %60 : f32 to vector<16x16xf32>
    %62 = arith.cmpf ole, %35, %61 : vector<16x16xf32>
    %63 = arith.extui %62 : vector<16x16xi1> to vector<16x16xi32>
    %64 = arith.sitofp %63 : vector<16x16xi32> to vector<16x16xf32>
    %cst_31 = arith.constant 1.000000e+00 : f32
    %65 = vector.broadcast %cst_31 : f32 to vector<16x16xf32>
    %66 = arith.subf %65, %37 : vector<16x16xf32>
    %67 = arith.mulf %64, %66 : vector<16x16xf32>
    %cst_32 = arith.constant 1.000000e+00 : f32
    %68 = vector.broadcast %cst_32 : f32 to vector<16x16xf32>
    %69 = arith.subf %68, %64 : vector<16x16xf32>
    %70 = arith.mulf %69, %37 : vector<16x16xf32>
    %71 = arith.addf %67, %70 : vector<16x16xf32>
    %c3 = arith.constant 3 : index
    %72 = memref.load %arg7[%c3] : memref<4xf32, #tpu.memory_space<smem>>
    %73 = vector.shape_cast %71 : vector<16x16xf32> to vector<1x16x16xf32>
    %cst_33 = arith.constant dense<0.000000e+00> : vector<1xf32>
    %74 = vector.multi_reduction <add>, %73, %cst_33 [1, 2] : vector<1x16x16xf32> to vector<1xf32>
    %75 = vector.shape_cast %74 : vector<1xf32> to vector<1x1x1xf32>
    %76 = vector.extract %75[0, 0, 0] : f32 from vector<1x1x1xf32>
    %77 = arith.addf %72, %76 : f32
    %c3_34 = arith.constant 3 : index
    %78 = memref.load %arg7[%c3_34] : memref<4xf32, #tpu.memory_space<smem>>
    memref.store %77, %arg7[%c3_34] : memref<4xf32, #tpu.memory_space<smem>>
    %c1_i32 = arith.constant 1 : i32
    %79 = arith.cmpi eq, %arg0, %c1_i32 : i32
    %80 = arith.extui %79 : i1 to i32
    %c0_i32_35 = arith.constant 0 : i32
    %81 = arith.cmpi ne, %80, %c0_i32_35 : i32
    scf.if %81 {
      %c0_36 = arith.constant 0 : index
      %82 = memref.load %arg7[%c0_36] : memref<4xf32, #tpu.memory_space<smem>>
      %c1_37 = arith.constant 1 : index
      %83 = memref.load %arg7[%c1_37] : memref<4xf32, #tpu.memory_space<smem>>
      %cst_38 = arith.constant 9.99999996E-13 : f32
      %84 = arith.maximumf %83, %cst_38 : f32
      %85 = arith.divf %82, %84 : f32
      %c2_39 = arith.constant 2 : index
      %86 = memref.load %arg7[%c2_39] : memref<4xf32, #tpu.memory_space<smem>>
      %c0_40 = arith.constant 0 : index
      %87 = memref.load %arg7[%c0_40] : memref<4xf32, #tpu.memory_space<smem>>
      %88 = arith.subf %86, %87 : f32
      %c1_41 = arith.constant 1 : index
      %89 = memref.load %arg7[%c1_41] : memref<4xf32, #tpu.memory_space<smem>>
      %cst_42 = arith.constant 5.120000e+02 : f32
      %90 = arith.subf %cst_42, %89 : f32
      %cst_43 = arith.constant 9.99999996E-13 : f32
      %91 = arith.maximumf %90, %cst_43 : f32
      %92 = arith.divf %88, %91 : f32
      %c3_44 = arith.constant 3 : index
      %93 = memref.load %arg7[%c3_44] : memref<4xf32, #tpu.memory_space<smem>>
      %cst_45 = arith.constant 5.000000e-01 : f32
      %94 = arith.mulf %93, %cst_45 : f32
      %95 = arith.subf %85, %92 : f32
      %cst_46 = arith.constant 1.000000e-01 : f32
      %96 = arith.mulf %cst_46, %95 : f32
      %97 = arith.addf %94, %96 : f32
      %c0_47 = arith.constant 0 : index
      %c0_48 = arith.constant 0 : index
      %98 = memref.load %arg6[%c0_47, %c0_48] : memref<1x1xf32, #tpu.memory_space<smem>>
      memref.store %97, %arg6[%c0_47, %c0_48] : memref<1x1xf32, #tpu.memory_space<smem>>
    } else {
    }
    return
  }
  func.func @transform_0(%arg0: i32) -> (i32, i32, i32) {
    %c0_i32 = arith.constant 0 : i32
    %c0_i32_0 = arith.constant 0 : i32
    %c0_i32_1 = arith.constant 0 : i32
    return %arg0, %c0_i32, %c0_i32_0 : i32, i32, i32
  }
  func.func @transform_1(%arg0: i32) -> (i32, i32, i32, i32) {
    %c0_i32 = arith.constant 0 : i32
    %c0_i32_0 = arith.constant 0 : i32
    %c0_i32_1 = arith.constant 0 : i32
    %c0_i32_2 = arith.constant 0 : i32
    return %arg0, %c0_i32, %c0_i32_0, %c0_i32_1 : i32, i32, i32, i32
  }
  func.func @transform_2(%arg0: i32) -> (i32, i32, i32) {
    %c0_i32 = arith.constant 0 : i32
    %c0_i32_0 = arith.constant 0 : i32
    %c0_i32_1 = arith.constant 0 : i32
    return %arg0, %c0_i32, %c0_i32_0 : i32, i32, i32
  }
  func.func @transform_3(%arg0: i32) -> (i32, i32) {
    %c0_i32 = arith.constant 0 : i32
    %c0_i32_0 = arith.constant 0 : i32
    %c0_i32_1 = arith.constant 0 : i32
    return %c0_i32, %c0_i32_0 : i32, i32
  }
  func.func @transform_4(%arg0: i32) -> (i32, i32) {
    %c0_i32 = arith.constant 0 : i32
    %c0_i32_0 = arith.constant 0 : i32
    %c0_i32_1 = arith.constant 0 : i32
    return %c0_i32, %c0_i32_0 : i32, i32
  }
  func.func @transform_5(%arg0: i32) -> (i32, i32) {
    %c0_i32 = arith.constant 0 : i32
    %c0_i32_0 = arith.constant 0 : i32
    %c0_i32_1 = arith.constant 0 : i32
    return %c0_i32, %c0_i32_0 : i32, i32
  }
}

</mosaic_0001>

<bundles_post_ra>
// kernel: tpu_custom_call.1
= control target key start
LH: loop header
LB: loop body
LE: loop exit
PB: predicated region body
PF: predicated region fallthrough
CT: control target
= control target key end

     0   :  { %s1624_s0 = inlined_call_operand.hbm [shape: f32[2,8,128], index: 0, kind: input, shape index: {}]   ;;  %s1625_s1 = inlined_call_operand.hbm [shape: f32[2,16,8,128], index: 1, kind: input, shape index: {}]   ;;  %s1626_s2 = inlined_call_operand.hbm [shape: f32[2,16,16], index: 2, kind: input, shape index: {}]   ;;  %s1627_s3 = inlined_call_operand.hbm [shape: f32[128,128], index: 3, kind: input, shape index: {}]   ;;  %s1628_s4 = inlined_call_operand.hbm [shape: f32[128,128], index: 4, kind: input, shape index: {}]   ;;  %s1629_s5 = inlined_call_operand.hbm [shape: f32[1,1], index: 5, kind: output, shape index: {}]  }
   0x1   :  { %1633 = sst [smem:[#allocation17_spill]] %s1625_s1 }
   0x2   :  { %1634 = sst [smem:[#allocation18_spill]] %s1627_s3 }
   0x3   :  { %10 = vsyncpa [#allocation4], 0 }
   0x4   :  { %12 = vsyncpa [#allocation4 + $0x1], 0 }
   0x5   :  { %13 = vsyncpa [#allocation7], 0 }
   0x6   :  { %15 = vsyncpa [#allocation7 + $0x1], 0 }
   0x7   :  { %16 = vsyncpa [#allocation10], 0 }
   0x8   :  { %17 = vsyncpa [#allocation5], 0  ;;  %s1377_s18 = smov 0   ;;  %s1379_s19 = smov 0  }
   0x9   :  { %s1381_s20 = smov 0   ;;  %s1383_s21 = smov 0  }
   0xa LB: > { %s1396_s22 = sadd.s32 4294967295, %s1337_s21   ;;  %p43_p0 = scmp.ne.s32.totalorder %s1329_s19, %s1325_s18  ;;  %s1337_s21 = sphi %s1383_s21, %s1646_s21   ;;  %s1333_s20 = sphi %s1381_s20, %s1645_s20   ;;  %s1329_s19 = sphi %s1379_s19, %s1644_s19   ;;  %s1325_s18 = sphi %s1377_s18, %s1643_s18  }
   0xb   : > { %p44_p1 = scmp.eq.s32.totalorder %s1396_s22, 0  ;;  %p969_p2 = scmp.ge.s32.totalorder %s1337_s21, 1 }
   0xc   : > { %p169_p3 = scmp.lt.s32.totalorder %s1337_s21, 3  ;;  %s1636_s3 = sld [smem:[#allocation18_spill]] }
   0xd   : > { %p1404_p4 = por %p44_p1, %p43_p0  ;;  %s1339_s28 = smov [#allocation9]  }
   0xe   : > { %p1411_p5 = pnand %p969_p2, %p169_p3  ;;  %s182_s29 = sshll.u32 %s1339_s28, 4  ;;  %s183_s29 = int_to_ptr.vmem [resolvable:$true] %s182_s29 }
   0xf   : > { %s1424_s6 = sadd.s32 1, %s1337_s21   ;;  %s1630_s7 = smov 128  }
  0x10   : > { %p1054_p6 = pneg %p1411_p5  ;;  %s1632_s8 = smov 8  }
  0x11   : > { %s27_s9 = ssub.s32 %s1337_s21, %s1424_s6  ;;  %s30_s10 = sadd.s32 1, %s1333_s20 }
  0x12   : > { %s180_s26 = sshll.u32 %s1636_s3, 4  ;;  %p1419_p7 = pnand %p1054_p6, %p44_p1  ;;  %s181_s26 = int_to_ptr.hbm [resolvable:$true] %s180_s26 }
  0x13   : > { %p28_p8 = scmp.eq.s32.totalorder %s27_s9, 0  ;;  %p37_p9 = scmp.ne.s32.totalorder %s1333_s20, %s1329_s19 }
  0x14   : > { %1057 = dma.hbm_to_vmem [thread:$0]  (!%p1419_p7), %s181_s26, 2048, %s183_s29, [#allocation10], %s1630_s7, %s1630_s7, %s1632_s8  }
  0x15   : > { %p38_p10 = scmp.eq.s32.totalorder %s1337_s21, 0  ;;  %p1073_p11 = scmp.lt.s32.totalorder %s1337_s21, 2 }
  0x16   : > { %s1439_s11 = scalar_select %p28_p8, %s1333_s20, %s30_s10  }
  0x17   : > { %p39_p12 = por %p38_p10, %p37_p9  ;;  %s1442_s12 = sand.u32 1, %s1333_s20  }
  0x18   : > { %s229_s13 = sand.u32 1, %s1337_s21   ;;  %s975_s14 = sshll.u32 %s1442_s12, 7 }
  0x19   : > { %p1446_p13 = pnand %p1073_p11, %p39_p12  ;;  %s1001_s16 = sshll.u32 %s1337_s21, 7 }
  0x1a   : > { %s1640_s1 = sld [smem:[#allocation17_spill]]  ;;  %s233_s26 = scalar_lea.vmem [#allocation6], %s975_s14 }
  0x1b   : > { %s241_s28 = sshll.u32 %s233_s26, 4  ;;  %s1454_s29 = scalar_lea.sflag [#allocation7], %s229_s13  ;;  %s242_s28 = int_to_ptr.vmem [resolvable:$true] %s241_s28 }
  0x1c   : > { %p1161_p2 = pneg %p1446_p13 }
  0x20   : > { %s238_s24 = scalar_lea.hbm %s1640_s1, %s1001_s16  ;;  %s1164_s16 = scalar_lea.hbm %s1640_s1, 256 }
  0x21   : > { %s239_s25 = sshll.u32 %s238_s24, 4  ;;  %s240_s25 = int_to_ptr.hbm [resolvable:$true] %s239_s25 }
  0x22   : > { %s1157_s9 = sshra.s32 %s240_s25, 4  ;;  %s1158_s9 = int_to_ptr.hbm [resolvable:$true] %s1157_s9 }
  0x23   : > { %s1159_s10 = scalar_lea.hbm %s1158_s9, 128  ;;  %p1165_p8 = scmp.lt.s32.totalorder %s1158_s9, %s1640_s1 }
  0x24   : > { %p1160_p0 = scmp.ne.s32.totalorder %s1158_s9, %s1159_s10  ;;  %p1166_p9 = scmp.lt.s32.totalorder %s1164_s16, %s1159_s10 }
  0x26   : > { %p1162_p3 = pnand %p1161_p2, %p1160_p0  ;;  %p1167_p10 = por %p1166_p9, %p1165_p8 }
  0x28   : > { %p1163_p6 = pneg %p1162_p3 }
  0x2a   : > { %p1168_p11 = pnand %p1167_p10, %p1163_p6 }
  0x2c   : > { %1171 = shalt.err (!%p1168_p11)
}
  0x2d   : > { %s1641_s13 = smov 128   ;;  %s194_s26 = sshll.u32 %s1628_s4, 4  ;;  %s195_s26 = int_to_ptr.hbm [resolvable:$true] %s194_s26 }
  0x2e   : > { %1067 = dma.hbm_to_vmem [thread:$0]  (!%p1446_p13), %s240_s25, 2048, %s242_s28, %s1454_s29, %s1641_s13, %s1641_s13, %s1632_s8  }
  0x2f   : > { %s1342_s9 = smov [#allocation11]   ;;  %s973_s17 = sshll.u32 %s1442_s12, 3 }
  0x30   : > { %s196_s10 = sshll.u32 %s1342_s9, 4  ;;  %s974_s16 = sshll.u32 %s1337_s21, 3  ;;  %s197_s10 = int_to_ptr.vmem [resolvable:$true] %s196_s10 }
  0x31   : > { %1060 = dma.hbm_to_vmem [thread:$0]  (!%p1419_p7), %s195_s26, 2048, %s197_s10, [#allocation10], %s1641_s13, %s1641_s13, %s1632_s8  }
  0x32   : > { %s218_s25 = scalar_lea.hbm %s1624_s0, %s974_s16  ;;  %s214_s1 = scalar_lea.vmem [#allocation3], %s973_s17 }
  0x33   : > { %s220_s28 = sshll.u32 %s218_s25, 4  ;;  %s222_s7 = sshll.u32 %s214_s1, 4  ;;  %s221_s28 = int_to_ptr.hbm [resolvable:$true] %s220_s28  ;;  %s223_s7 = int_to_ptr.vmem [resolvable:$true] %s222_s7 }
  0x34   : > { %s211_s24 = scalar_lea.sflag [#allocation4], %s1442_s12  ;;  %s1217_s9 = sshra.s32 %s221_s28, 4  ;;  %s1218_s9 = int_to_ptr.hbm [resolvable:$true] %s1217_s9 }
  0x35   : > { %s1219_s3 = scalar_lea.hbm %s1218_s9, 8  ;;  %s1224_s10 = scalar_lea.hbm %s1624_s0, 16 }
  0x36   : > { %p1220_p12 = scmp.ne.s32.totalorder %s1218_s9, %s1219_s3  ;;  %p1225_p3 = scmp.lt.s32.totalorder %s1218_s9, %s1624_s0 }
  0x37   : > { %p1226_p6 = scmp.lt.s32.totalorder %s1224_s10, %s1219_s3 }
  0x38   : > { %p1222_p0 = pnand %p1220_p12, %p1161_p2 }
  0x39   : > { %p1227_p8 = por %p1226_p6, %p1225_p3 }
  0x3a   : > { %p1223_p7 = pneg %p1222_p0 }
  0x3c   : > { %p1228_p9 = pnand %p1227_p8, %p1223_p7 }
  0x3e   : > { %1231 = shalt.err (!%p1228_p9)
}
  0x3f   : > { %1064 = dma.hbm_to_vmem [thread:$0]  (!%p1446_p13), %s221_s28, 128, %s223_s7, %s211_s24  }
  0x40   : > { %s978_s1 = sshll.u32 %s1442_s12, 4  ;;  %s1002_s17 = sshll.u32 %s1337_s21, 4 }
  0x41   : > { %s260_s30 = scalar_lea.hbm %s1626_s2, %s1002_s17  ;;  %s255_s8 = scalar_lea.vmem [#allocation8], %s978_s1 }
  0x42   : > { %s261_s26 = sshll.u32 %s260_s30, 4  ;;  %s263_s14 = sshll.u32 %s255_s8, 4  ;;  %s262_s26 = int_to_ptr.hbm [resolvable:$true] %s261_s26  ;;  %s264_s14 = int_to_ptr.vmem [resolvable:$true] %s263_s14 }
  0x43   : > { %s1247_s3 = sshra.s32 %s262_s26, 4  ;;  %s1254_s21 = scalar_lea.hbm %s1626_s2, 32  ;;  %s1248_s3 = int_to_ptr.hbm [resolvable:$true] %s1247_s3 }
  0x44   : > { %s1249_s9 = scalar_lea.hbm %s1248_s3, 16  ;;  %p1255_p0 = scmp.lt.s32.totalorder %s1248_s3, %s1626_s2 }
  0x45   : > { %p1250_p10 = scmp.ne.s32.totalorder %s1248_s3, %s1249_s9  ;;  %p1256_p7 = scmp.lt.s32.totalorder %s1254_s21, %s1249_s9 }
  0x47   : > { %p1252_p11 = pnand %p1250_p10, %p1161_p2  ;;  %p1257_p3 = por %p1256_p7, %p1255_p0 }
  0x49   : > { %p1253_p12 = pneg %p1252_p11 }
  0x4b   : > { %p1258_p6 = pnand %p1257_p3, %p1253_p12 }
  0x4d   : > { %1261 = shalt.err (!%p1258_p6)
}
  0x4e   : > { %s1642_s8 = smov 8   ;;  %275 = sbr.rel (%p1411_p5) target bundleno = 1061 (0x425), region = 40 }
  0x4f   : > { %1070 = dma.hbm_to_vmem [thread:$0]  (!%p1446_p13), %s262_s26, 256, %s264_s14, %s1454_s29, %s1641_s13, %s1641_s13, %s1642_s8  }
  0x50   : > { %s277_s10 = sand.u32 (!%p1411_p5), 1, %s1329_s19  }
  0x51   : > { %s982_s16 = sshll.u32 (!%p1411_p5), %s277_s10, 3  ;;  %s278_s1 = scalar_lea.sflag (!%p1411_p5), [#allocation4], %s277_s10 }
  0x52   : > { %s1521_s17 = scalar_lea.vmem (!%p1411_p5), [#allocation3], %s982_s16 }
  0x53   : > { %1308 = dma.done.wait (%p1404_p4), %s278_s1, 128  }
  0x54   : > { %1310 = vsyncadd (%p1404_p4), %s278_s1, 4294967168  ;;  %s287_s15 = sand.u32 1, %s1396_s22   ;;  %s983_s18 = sshll.u32 %s277_s10, 7 }
  0x55   : > { %s288_s29 = scalar_lea.sflag [#allocation7], %s287_s15  ;;  %s1528_s13 = scalar_lea.vmem [#allocation6], %s983_s18 }
  0x56   : > { %1312 = dma.done.wait (%p1404_p4), %s288_s29, 2304  }
  0x57   : > { %1314 = vsyncadd (%p1404_p4), %s288_s29, 4294964992  ;;  %s984_s27 = sshll.u32 %s277_s10, 4 }
  0x58   : > { %s1534_s25 = scalar_lea.vmem [#allocation8], %s984_s27 }
  0x59   : > { %1316 = dma.done.wait (%p44_p1), [#allocation10], 4096  }
  0x5a   : > { %1318 = vsyncadd (%p44_p1), [#allocation10], 4294963200  ;;  %v507_v0 = vld [vmem:[#allocation9 + $0x78] sm:$0xff]  ;;  %v506_v2 = vld [vmem:[#allocation9 + $0x70] sm:$0xff]  ;;  %vm560_vm0 = vcmask 1041409   ;;  %vm562_vm1 = vcmask 1042434  }
  0x5b   : > { %v543_v1 = vld [vmem:[#allocation11 + $0x78] sm:$0xff]  ;;  %508 = vmatpush.msra.mxu0 %v507_v0  ;;  %v542_v3 = vld [vmem:[#allocation11 + $0x70] sm:$0xff]  ;;  %v505_v4 = vld [vmem:[#allocation9 + $0x68] sm:$0xff]  ;;  %vm564_vm2 = vcmask 1043459   ;;  %vm566_vm3 = vcmask 1044484   ;;  %vm568_vm4 = vcmask 1045509  }
  0x5c   : > { %1003 = vmatpush.msra.mxu3 %v543_v1  ;;  %583 = vmatpush.msra.mxu1 %v543_v1  ;;  %v541_v5 = vld [vmem:[#allocation11 + $0x68] sm:$0xff]  ;;  %v504_v6 = vld [vmem:[#allocation9 + $0x60] sm:$0xff]  ;;  %v503_v8 = vld [vmem:[#allocation9 + $0x58] sm:$0xff]  ;;  %vm570_vm5 = vcmask 1046534   ;;  %vm572_vm6 = vcmask 1047559   ;;  %vm711_vm7 = vcmask 130048  }
  0x5d   : > { %509 = vmatpush.msra.mxu0 %v506_v2  ;;  %v540_v7 = vld [vmem:[#allocation11 + $0x60] sm:$0xff]  ;;  %v539_v9 = vld [vmem:[#allocation11 + $0x58] sm:$0xff]  ;;  %v502_v10 = vld [vmem:[#allocation9 + $0x50] sm:$0xff]  ;;  %s1343_s23 = smov 0.0  }
  0x5e   : > { %1004 = vmatpush.msra.mxu3 %v542_v3  ;;  %584 = vmatpush.msra.mxu1 %v542_v3  ;;  %v538_v11 = vld [vmem:[#allocation11 + $0x50] sm:$0xff]  ;;  %v501_v12 = vld [vmem:[#allocation9 + $0x48] sm:$0xff]  ;;  %v500_v14 = vld [vmem:[#allocation9 + $0x40] sm:$0xff]  ;;  %1047 = sst [smem:[#allocation2 + $0x1]] (%p44_p1), %s1343_s23 }
  0x5f   : > { %510 = vmatpush.msra.mxu0 %v505_v4  ;;  %v537_v13 = vld [vmem:[#allocation11 + $0x48] sm:$0xff]  ;;  %v536_v15 = vld [vmem:[#allocation11 + $0x40] sm:$0xff]  ;;  %v356_v16 = vld [vmem:[%s1521_s17] sm:$0xff]  ;;  %1048 = sst [smem:[#allocation2 + $0x2]] (%p44_p1), %s1343_s23 }
  0x60   : > { %1005 = vmatpush.msra.mxu3 %v541_v5  ;;  %585 = vmatpush.msra.mxu1 %v541_v5  ;;  %v357_v17 = vrot.slane %v356_v16, 4  ;;  %v372_v18 = vld [vmem:[%s1528_s13 + $0x40] sm:$0xff]  ;;  %v373_v19 = vld [vmem:[%s1528_s13 + $0x48] sm:$0xff]  ;;  %v374_v20 = vld [vmem:[%s1528_s13 + $0x50] sm:$0xff]  ;;  %1046 = sst [smem:[#allocation2]] (%p44_p1), %s1343_s23 }
  0x61   : > { %511 = vmatpush.msra.mxu0 %v504_v6  ;;  %v375_v21 = vld [vmem:[%s1528_s13 + $0x58] sm:$0xff]  ;;  %v376_v22 = vld [vmem:[%s1528_s13 + $0x60] sm:$0xff]  ;;  %v377_v23 = vld [vmem:[%s1528_s13 + $0x68] sm:$0xff]  ;;  %v428_v24 = vrot.slane %v372_v18, 4  ;;  %v434_v25 = vrot.slane %v373_v19, 4  ;;  %v440_v26 = vrot.slane %v374_v20, 4 }
  0x62   : > { %1006 = vmatpush.msra.mxu3 %v540_v7  ;;  %586 = vmatpush.msra.mxu1 %v540_v7  ;;  %v358_v27 = vadd.f32 %v357_v17, %v356_v16  ;;  %v378_v28 = vld [vmem:[%s1528_s13 + $0x70] sm:$0xff]  ;;  %v446_v29 = vrot.slane %v375_v21, 4  ;;  %v452_v30 = vrot.slane %v376_v22, 4  ;;  %v458_v31 = vrot.slane %v377_v23, 4  ;;  %v499_v32 = vld [vmem:[#allocation9 + $0x38] sm:$0xff]  ;;  %v497_v52 = vld [vmem:[#allocation9 + $0x28] sm:$0xff] }
  0x63   : > { %512 = vmatpush.msra.mxu0 %v503_v8  ;;  %v535_v33 = vld [vmem:[#allocation11 + $0x38] sm:$0xff]  ;;  %v429_v34 = vadd.f32 %v428_v24, %v372_v18  ;;  %v435_v35 = vadd.f32 %v434_v25, %v373_v19  ;;  %v441_v36 = vadd.f32 %v440_v26, %v374_v20  ;;  %v464_v37 = vrot.slane %v378_v28, 4  ;;  %v498_v42 = vld [vmem:[#allocation9 + $0x30] sm:$0xff]  ;;  %v533_v53 = vld [vmem:[#allocation11 + $0x28] sm:$0xff]  ;;  %1049 = sst [smem:[#allocation2 + $0x3]] (%p44_p1), %s1343_s23  ;;  %p993_p1 = scmp.ne.s32.totalorder %s1396_s22, 1 }
  0x64   : > { %1007 = vmatpush.msra.mxu3 %v539_v9  ;;  %587 = vmatpush.msra.mxu1 %v539_v9  ;;  %v359_v38 = vrot.slane %v358_v27, 2  ;;  %v447_v39 = vadd.f32 %v446_v29, %v375_v21  ;;  %v453_v40 = vadd.f32 %v452_v30, %v376_v22  ;;  %v459_v41 = vadd.f32 %v458_v31, %v377_v23  ;;  %v534_v43 = vld [vmem:[#allocation11 + $0x30] sm:$0xff]  ;;  %v496_v62 = vld [vmem:[#allocation9 + $0x20] sm:$0xff]  ;;  %v379_v5 = vld [vmem:[%s1528_s13 + $0x78] sm:$0xff]  ;;  %s988_s30 = sld [smem:[#allocation2 + $0x1]] }
  0x65   : > { %513 = vmatpush.msra.mxu0 %v502_v10  ;;  %v430_v44 = vrot.slane %v429_v34, 2  ;;  %v436_v45 = vrot.slane %v435_v35, 2  ;;  %v442_v46 = vrot.slane %v441_v36, 2  ;;  %v465_v47 = vadd.f32 %v464_v37, %v378_v28  ;;  %v532_v63 = vld [vmem:[#allocation11 + $0x20] sm:$0xff]  ;;  %v495_v9 = vld [vmem:[#allocation9 + $0x18] sm:$0xff]  ;;  %v530_v16 = vld [vmem:[#allocation11 + $0x10] sm:$0xff] }
  0x66   : > { %1008 = vmatpush.msra.mxu3 %v538_v11  ;;  %588 = vmatpush.msra.mxu1 %v538_v11  ;;  %v360_v48 = vadd.f32 %v359_v38, %v358_v27  ;;  %v448_v49 = vrot.slane %v447_v39, 2  ;;  %v454_v50 = vrot.slane %v453_v40, 2  ;;  %v460_v51 = vrot.slane %v459_v41, 2  ;;  %v531_v10 = vld [vmem:[#allocation11 + $0x18] sm:$0xff]  ;;  %v364_v21 = vld [vmem:[%s1528_s13] sm:$0xff]  ;;  %v365_v26 = vld [vmem:[%s1528_s13 + $0x8] sm:$0xff] }
  0x67   : > { %514 = vmatpush.msra.mxu0 %v501_v12  ;;  %v431_v54 = vadd.f32 %v430_v44, %v429_v34  ;;  %v437_v55 = vadd.f32 %v436_v45, %v435_v35  ;;  %v443_v56 = vadd.f32 %v442_v46, %v441_v36  ;;  %v466_v57 = vrot.slane %v465_v47, 2  ;;  %v366_v27 = vld [vmem:[%s1528_s13 + $0x10] sm:$0xff]  ;;  %v367_v28 = vld [vmem:[%s1528_s13 + $0x18] sm:$0xff]  ;;  %v493_v34 = vld [vmem:[#allocation9 + $0x8] sm:$0xff]  ;;  %s989_s3 = sld [smem:[#allocation2 + $0x2]] }
  0x68   : > { %1009 = vmatpush.msra.mxu3 %v537_v13  ;;  %589 = vmatpush.msra.mxu1 %v537_v13  ;;  %v361_v58 = vrot.slane %v360_v48, 1  ;;  %v449_v59 = vadd.f32 %v448_v49, %v447_v39  ;;  %v455_v60 = vadd.f32 %v454_v50, %v453_v40  ;;  %v461_v61 = vadd.f32 %v460_v51, %v459_v41  ;;  %v529_v35 = vld [vmem:[#allocation11 + $0x8] sm:$0xff]  ;;  %v492_v45 = vld [vmem:[#allocation9] sm:$0xff]  ;;  %s750_s9 = sld [smem:[#allocation2]]  ;;  %s1345_s17 = smov (!%p993_p1), 1e-12  }
  0x69   : > { %515 = vmatpush.msra.mxu0 %v500_v14  ;;  %v432_v0 = vrot.slane %v431_v54, 1  ;;  %v438_v1 = vrot.slane %v437_v55, 1  ;;  %v444_v2 = vrot.slane %v443_v56, 1  ;;  %v467_v3 = vadd.f32 %v466_v57, %v465_v47  ;;  %v369_v39 = vld [vmem:[%s1528_s13 + $0x28] sm:$0xff]  ;;  %v528_v46 = vld [vmem:[#allocation11] sm:$0xff]  ;;  %v370_v57 = vld [vmem:[%s1528_s13 + $0x30] sm:$0xff] }
  0x6a   : > { %1010 = vmatpush.msra.mxu3 %v536_v15  ;;  %590 = vmatpush.msra.mxu1 %v536_v15  ;;  %v362_v4 = vadd.f32 %v361_v58, %v360_v48  ;;  %v450_v6 = vrot.slane %v449_v59, 1  ;;  %v456_v7 = vrot.slane %v455_v60, 1  ;;  %v462_v8 = vrot.slane %v461_v61, 1  ;;  %v494_v15 = vld [vmem:[#allocation9 + $0x10] sm:$0xff]  ;;  %s992_s8 = sld [smem:[#allocation2 + $0x3]] }
  0x6b   : > { %516 = vmatpush.msra.mxu0 %v499_v32  ;;  %v433_v11 = vadd.f32 %v432_v0, %v431_v54  ;;  %v439_v12 = vadd.f32 %v438_v1, %v437_v55  ;;  %v445_v13 = vadd.f32 %v444_v2, %v443_v56  ;;  %v468_v14 = vrot.slane %v467_v3, 1 }
  0x6c   : > { %1011 = vmatpush.msra.mxu3 %v535_v33  ;;  %591 = vmatpush.msra.mxu1 %v535_v33  ;;  %v363_v17 = vmul.f32 0.125, %v362_v4  ;;  %v451_v18 = vadd.f32 %v450_v6, %v449_v59  ;;  %v457_v19 = vadd.f32 %v456_v7, %v455_v60  ;;  %v463_v20 = vadd.f32 %v462_v8, %v461_v61  ;;  %v368_v33 = vld [vmem:[%s1528_s13 + $0x20] sm:$0xff] }
  0x6d   : > { %517 = vmatpush.msra.mxu0 %v498_v42  ;;  %v469_v22 = vadd.f32 %v468_v14, %v467_v3  ;;  %v470_v23 = vrot.slane %v379_v5, 4  ;;  %v484_v24 = vmul.f32 0.125, %v433_v11  ;;  %v485_v25 = vmul.f32 0.125, %v439_v12  ;;  %v371_v12 = vld [vmem:[%s1528_s13 + $0x38] sm:$0xff] }
  0x6e   : > { %1012 = vmatpush.msra.mxu3 %v534_v43  ;;  %592 = vmatpush.msra.mxu1 %v534_v43  ;;  %v486_v29 = vmul.f32 0.125, %v445_v13  ;;  %v487_v30 = vmul.f32 0.125, %v451_v18  ;;  %v488_v31 = vmul.f32 0.125, %v457_v19  ;;  %v489_v32 = vmul.f32 0.125, %v463_v20 }
  0x6f   : > { %518 = vmatpush.msra.mxu0 %v497_v52  ;;  %v471_v36 = vadd.f32 %v470_v23, %v379_v5  ;;  %v490_v37 = vmul.f32 0.125, %v469_v22  ;;  %v574_v38 = vsel %vm560_vm0, %v485_v25, %v484_v24  ;;  %v380_v40 = vrot.slane %v364_v21, 4 }
  0x70   : > { %1013 = vmatpush.msra.mxu3 %v533_v53  ;;  %593 = vmatpush.msra.mxu1 %v533_v53  ;;  %v575_v41 = vsel %vm562_vm1, %v486_v29, %v574_v38  ;;  %v386_v42 = vrot.slane %v365_v26, 4  ;;  %v392_v43 = vrot.slane %v366_v27, 4  ;;  %v398_v44 = vrot.slane %v367_v28, 4 }
  0x71   : > { %519 = vmatpush.msra.mxu0 %v496_v62  ;;  %v472_v47 = vrot.slane %v471_v36, 2  ;;  %v576_v48 = vsel %vm564_vm2, %v487_v30, %v575_v41  ;;  %v381_v49 = vadd.f32 %v380_v40, %v364_v21  ;;  %v404_v50 = vrot.slane %v368_v33, 4 }
  0x72   : > { %1014 = vmatpush.msra.mxu3 %v532_v63  ;;  %594 = vmatpush.msra.mxu1 %v532_v63  ;;  %v577_v51 = vsel %vm566_vm3, %v488_v31, %v576_v48  ;;  %v387_v52 = vadd.f32 %v386_v42, %v365_v26  ;;  %v393_v53 = vadd.f32 %v392_v43, %v366_v27  ;;  %v410_v54 = vrot.slane %v369_v39, 4 }
  0x73   : > { %520 = vmatpush.msra.mxu0 %v495_v9  ;;  %v473_v55 = vadd.f32 %v472_v47, %v471_v36  ;;  %v578_v56 = vsel %vm568_vm4, %v489_v32, %v577_v51  ;;  %v382_v58 = vrot.slane %v381_v49, 2  ;;  %v399_v59 = vadd.f32 %v398_v44, %v367_v28 }
  0x74   : > { %1015 = vmatpush.msra.mxu3 %v531_v10  ;;  %595 = vmatpush.msra.mxu1 %v531_v10  ;;  %v579_v60 = vsel %vm570_vm5, %v490_v37, %v578_v56  ;;  %v388_v61 = vrot.slane %v387_v52, 2  ;;  %v394_v62 = vrot.slane %v393_v53, 2  ;;  %v405_v63 = vadd.f32 %v404_v50, %v368_v33 }
  0x75   : > { %521 = vmatpush.msra.mxu0 %v494_v15  ;;  %v474_v0 = vrot.slane %v473_v55, 1  ;;  %v383_v1 = vadd.f32 %v382_v58, %v381_v49  ;;  %v400_v2 = vrot.slane %v399_v59, 2  ;;  %v411_v3 = vadd.f32 %v410_v54, %v369_v39 }
  0x76   : > { %1016 = vmatpush.msra.mxu3 %v530_v16  ;;  %596 = vmatpush.msra.mxu1 %v530_v16  ;;  %v389_v4 = vadd.f32 %v388_v61, %v387_v52  ;;  %v395_v5 = vadd.f32 %v394_v62, %v393_v53  ;;  %v406_v6 = vrot.slane %v405_v63, 2  ;;  %v416_v7 = vrot.slane %v370_v57, 4 }
  0x77   : > { %522 = vmatpush.msra.mxu0 %v493_v34  ;;  %v475_v8 = vadd.f32 %v474_v0, %v473_v55  ;;  %v384_v9 = vrot.slane %v383_v1, 1  ;;  %v401_v10 = vadd.f32 %v400_v2, %v399_v59  ;;  %v412_v11 = vrot.slane %v411_v3, 2 }
  0x78   : > { %1017 = vmatpush.msra.mxu3 %v529_v35  ;;  %597 = vmatpush.msra.mxu1 %v529_v35  ;;  %v390_v13 = vrot.slane %v389_v4, 1  ;;  %v396_v14 = vrot.slane %v395_v5, 1  ;;  %v407_v15 = vadd.f32 %v406_v6, %v405_v63  ;;  %v417_v16 = vadd.f32 %v416_v7, %v370_v57 }
  0x79   : > { %523 = vmatpush.msra.mxu0 %v492_v45  ;;  %v491_v18 = vmul.f32 0.125, %v475_v8  ;;  %v402_v19 = vrot.slane %v401_v10, 1  ;;  %v413_v20 = vadd.f32 %v412_v11, %v411_v3  ;;  %v422_v28 = vrot.slane %v371_v12, 4 }
  0x7a   : > { %1018 = vmatpush.msra.mxu3 %v528_v46  ;;  %524 = vmatmul.f32.vlgmr.msra.gmra.mxu0 %v363_v17  ;;  %v385_v17 = vadd.f32 %v384_v9, %v383_v1  ;;  %v391_v21 = vadd.f32 %v390_v13, %v389_v4  ;;  %v397_v22 = vadd.f32 %v396_v14, %v395_v5  ;;  %v408_v23 = vrot.slane %v407_v15, 1  ;;  %v1572_v4 = vld [vmem:[%s1534_s25] sm:$0xff]  ;;  %v1575_v5 = vld [vmem:[%s1534_s25 + $0x8] sm:$0xff] }
  0x7b   : > { %598 = vmatpush.msra.mxu1 %v528_v46  ;;  %v418_v24 = vrot.slane %v417_v16, 2  ;;  %v580_v25 = vsel %vm572_vm6, %v491_v18, %v579_v60  ;;  %v403_v26 = vadd.f32 %v402_v19, %v401_v10  ;;  %v414_v27 = vrot.slane %v413_v20, 1 }
  0x7c   : > { %602 = vmatmul.f32.vlgmr.msra.gmra.mxu3 %v580_v25  ;;  %v409_v29 = vadd.f32 %v408_v23, %v407_v15  ;;  %v476_v31 = vmul.f32 0.125, %v385_v17  ;;  %v477_v32 = vmul.f32 0.125, %v391_v21  ;;  %v423_v34 = vadd.f32 %v422_v28, %v371_v12 }
  0x7d   : > { %v419_v30 = vadd.f32 %v418_v24, %v417_v16  ;;  %v415_v33 = vadd.f32 %v414_v27, %v413_v20  ;;  %v478_v35 = vmul.f32 0.125, %v397_v22  ;;  %v479_v36 = vmul.f32 0.125, %v403_v26 }
  0x7e   : > { %v480_v38 = vmul.f32 0.125, %v409_v29  ;;  %v561_v39 = vsel %vm560_vm0, %v477_v32, %v476_v31  ;;  %v424_v40 = vrot.slane %v423_v34, 2  ;;  %v712_v6 = vsel %vm711_vm7, %v1572_v4, 0.0 }
  0x7f   : > { %v420_v37 = vrot.slane %v419_v30, 1  ;;  %v481_v41 = vmul.f32 0.125, %v415_v33  ;;  %v563_v42 = vsel %vm562_vm1, %v478_v35, %v561_v39  ;;  %v713_v7 = vsel %vm711_vm7, %v1575_v5, 0.0 }
  0x80   : > { %v565_v44 = vsel %vm564_vm2, %v479_v36, %v563_v42  ;;  %v425_v45 = vadd.f32 %v424_v40, %v423_v34  ;;  %v714_v8 = vadd.f32 %v713_v7, %v712_v6  ;;  %v676_v9 = vlaneseq }
  0x81   : > { %v421_v43 = vadd.f32 %v420_v37, %v419_v30  ;;  %v567_v46 = vsel %vm566_vm3, %v480_v38, %v565_v44 }
  0x82   : > { %v426_v48 = vrot.slane %v425_v45, 1  ;;  %v569_v49 = vsel %vm568_vm4, %v481_v41, %v567_v46  ;;  %715 = vadd.xlane.f32.xlu2 %v714_v8  ;;  %v677_v10 = vshrl.u32 %v676_v9, 7  ;;  %v680_v11 = vand.u32 127, %v676_v9 }
  0x83   : > { %v482_v47 = vmul.f32 0.125, %v421_v43  ;;  %v770_v9 = vsub.f32 1.0, %v1572_v4 }
  0x84   : > { %v427_v50 = vadd.f32 %v426_v48, %v425_v45  ;;  %vm681_vm8 = vcmp.eq.s32.totalorder %v677_v10, %v680_v11  ;;  %v678_v16 = vadd.s32 8, %v677_v10  ;;  %v771_v10 = vsub.f32 1.0, %v1575_v5 }
  0x85   : > { %v571_v51 = vsel %vm570_vm5, %v482_v47, %v569_v49 }
  0x86   : > { %v483_v52 = vmul.f32 0.125, %v427_v50  ;;  %vm682_vm9 = vcmp.eq.s32.totalorder %v678_v16, %v680_v11  ;;  %v1344_v11 = vmov 0.0  }
  0x88   : > { %v573_v53 = vsel %vm572_vm6, %v483_v52, %v571_v51 }
  0x89   : > { %599 = vmatmul.f32.vlgmr.msra.gmra.mxu1 %v573_v53 }
  0xf5   : > { %v716_v49 = vpop.xlane.xlu2 %715 }
  0xf6   : > { %v717_v50 = vrot.slane %v716_v49, 4 }
  0xf7   : > { %v525_v54 = vpop.f32.mrf.mxu0 }
  0xf8   : > { %v606_v55 = vperm.slane %v525_v54, 0  ;;  %v718_v51 = vadd.f32 %v717_v50, %v716_v49 }
  0xfa   : > { %v719_v52 = vrot.slane %v718_v51, 2 }
  0xfc   : > { %v720_v53 = vadd.f32 %v719_v52, %v718_v51 }
  0xfe   : > { %v721_v54 = vrot.slane %v720_v53, 1 }
  0xff   : > { %v603_v56 = vpop.f32.mrf.mxu3 }
 0x100   : > { %v608_v57 = vmul.f32 %v606_v55, %v603_v56 }
 0x102   : > { %623 = vmatpush.xpose.msra.mxu2 %v608_v57  ;;  %v633_v61 = vmul.f32 %v608_v57, %v608_v57 }
 0x106   : > { %v600_v58 = vpop.f32.mrf.mxu1 }
 0x107   : > { %v607_v59 = vmul.f32 %v606_v55, %v600_v58  ;;  %v722_v55 = vadd.f32 %v721_v54, %v720_v53 }
 0x109   : > { %v632_v60 = vmul.f32 %v607_v59, %v607_v59  ;;  %624 = vmatpush.xpose.msra.mxu2 %v607_v59  ;;  %1019 = vpush %v722_v55 }
 0x10b   : > { %634 = vadd.xlane.f32.xlu0 %v632_v60 }
 0x10c   : > { %625 = vmatmul.f32.vlgmr.msra.gmra.mxu2 %v607_v59 }
 0x113   : > { %636 = vadd.xlane.f32.xlu0 %v633_v61 }
 0x114   : > { %628 = vmatmul.f32.gmra.mxu2 %v608_v57 }
 0x13a   : > { %s1020_s26 = spop %1019 }
 0x13b   : > { %s755_s14 = sadd.f32 %s1020_s26, %s988_s30 }
 0x13d   : > { %757 = sst [smem:[#allocation2 + $0x1]] %s755_s14 }
 0x13e   : > { %s994_s1 = sld [smem:[#allocation2 + $0x1]] (!%p993_p1) }
 0x144   : > { %s802_s15 = smax.f32 (!%p993_p1), %s1345_s17, %s994_s1  ;;  %s822_s18 = ssub.f32 (!%p993_p1), 512.0, %s994_s1 }
 0x146   : > { %s823_s29 = smax.f32 (!%p993_p1), %s1345_s17, %s822_s18 }
 0x17e   : > { %v635_v62 = vpop.xlane.xlu0 %634 }
 0x186   : > { %v637_v1 = vpop.xlane.xlu0 %636 }
 0x18f   : > { %v626_v63 = vpop.f32.mrf.mxu2 }
 0x190   : > { %v638_v0 = vsub.f32 %v635_v62, %v626_v63 }
 0x192   : > { %640 = vxpose.xlu1.b32.start [1/2] (short) (narrow) %v638_v0, 16 }
 0x197   : > { %v629_v2 = vpop.f32.mrf.mxu2 }
 0x198   : > { %v639_v3 = vsub.f32 %v637_v1, %v629_v2 }
 0x19a   : > { %641 = vxpose.xlu1.b32.end [2/2] (short) (narrow) %v639_v3, 16 }
 0x236   : > { %v656_v12 = vpop.trf.xlu1 }
 0x237   : > { %v672_v13 = vadd.f32 %v656_v12, %v638_v0 }
 0x239   : > { %v674_v14 = vmax.f32 %v672_v13, 0.0 }
 0x23b   : > { %v683_v15 = vsel %vm681_vm8, 0.0, %v674_v14 }
 0x23c   : > { %1119 = vrsqrt.f32 %v683_v15  ;;  %vm692_vm10 = vcmp.eq.f32.partialorder %v683_v15, inf  ;;  %v695_v34 = vand.u32 2147483648, %v683_v15  ;;  %vm694_vm11 = vcmp.eq.f32.partialorder %v683_v15, 0.0 }
 0x23e   : > { %v657_v18 = vpop.trf.xlu1 }
 0x23f   : > { %v673_v17 = vadd.f32 %v657_v18, %v639_v3 }
 0x241   : > { %v675_v19 = vmax.f32 %v673_v17, 0.0 }
 0x242   : > { %v1120_v20 = vpop.eup %1119 }
 0x243   : > { %v686_v21 = vmul.f32 %v1120_v20, %v683_v15  ;;  %v684_v22 = vsel %vm682_vm9, 0.0, %v675_v19 }
 0x244   : > { %1121 = vrsqrt.f32 %v684_v22  ;;  %vm704_vm12 = vcmp.eq.f32.partialorder %v684_v22, inf  ;;  %v707_v38 = vand.u32 2147483648, %v684_v22  ;;  %vm706_vm13 = vcmp.eq.f32.partialorder %v684_v22, 0.0 }
 0x245   : > { %v687_v23 = vmul.f32 %v1120_v20, %v686_v21 }
 0x247   : > { %v688_v24 = vmul.f32 0.5, %v687_v23 }
 0x249   : > { %v689_v25 = vsub.f32 1.5, %v688_v24 }
 0x24a   : > { %v1122_v26 = vpop.eup %1121 }
 0x24b   : > { %v698_v27 = vmul.f32 %v1122_v26, %v684_v22  ;;  %v690_v28 = vmul.f32 %v1120_v20, %v689_v25 }
 0x24d   : > { %v691_v29 = vmul.f32 %v690_v28, %v683_v15  ;;  %v699_v30 = vmul.f32 %v1122_v26, %v698_v27 }
 0x24f   : > { %v700_v31 = vmul.f32 0.5, %v699_v30  ;;  %v693_v32 = vsel %vm692_vm10, %v683_v15, %v691_v29 }
 0x250   : > { %v1581_v36 = vsel %vm694_vm11, %v695_v34, %v693_v32 }
 0x251   : > { %v701_v33 = vsub.f32 1.5, %v700_v31  ;;  %v736_v40 = vmul.f32 %v1572_v4, %v1581_v36  ;;  %v724_v42 = vsel %vm711_vm7, %v1581_v36, 0.0 }
 0x253   : > { %v702_v35 = vmul.f32 %v1122_v26, %v701_v33  ;;  %v738_v46 = vsel %vm711_vm7, %v736_v40, 0.0 }
 0x255   : > { %v703_v37 = vmul.f32 %v702_v35, %v684_v22 }
 0x257   : > { %v705_v39 = vsel %vm704_vm12, %v684_v22, %v703_v37 }
 0x258   : > { %v708_v41 = vsel %vm706_vm13, %v707_v38, %v705_v39 }
 0x259   : > { %v725_v43 = vsel %vm711_vm7, %v708_v41, 0.0  ;;  %v737_v44 = vmul.f32 %v1575_v5, %v708_v41 }
 0x25a   : > { %v726_v45 = vadd.f32 %v725_v43, %v724_v42 }
 0x25b   : > { %v739_v47 = vsel %vm711_vm7, %v737_v44, 0.0 }
 0x25c   : > { %727 = vadd.xlane.f32.xlu2 %v726_v45  ;;  %v740_v48 = vadd.f32 %v739_v47, %v738_v46 }
 0x25e   : > { %741 = vadd.xlane.f32.xlu0 %v740_v48 }
 0x2cf   : > { %v728_v56 = vpop.xlane.xlu2 %727 }
 0x2d0   : > { %v729_v57 = vrot.slane %v728_v56, 4 }
 0x2d1   : > { %v742_v58 = vpop.xlane.xlu0 %741 }
 0x2d2   : > { %v730_v59 = vadd.f32 %v729_v57, %v728_v56  ;;  %v743_v60 = vrot.slane %v742_v58, 4 }
 0x2d4   : > { %v731_v61 = vrot.slane %v730_v59, 2  ;;  %v744_v62 = vadd.f32 %v743_v60, %v742_v58 }
 0x2d6   : > { %v732_v63 = vadd.f32 %v731_v61, %v730_v59  ;;  %v745_v0 = vrot.slane %v744_v62, 2 }
 0x2d8   : > { %v746_v1 = vadd.f32 %v745_v0, %v744_v62  ;;  %v733_v2 = vrot.slane %v732_v63, 1 }
 0x2da   : > { %v734_v3 = vadd.f32 %v733_v2, %v732_v63  ;;  %v747_v6 = vrot.slane %v746_v1, 1 }
 0x2dc   : > { %1021 = vpush %v734_v3  ;;  %v748_v7 = vadd.f32 %v747_v6, %v746_v1 }
 0x2de   : > { %1023 = vpush %v748_v7 }
 0x30d   : > { %s1022_s28 = spop %1021 }
 0x30e   : > { %s759_s12 = sadd.f32 %s1022_s28, %s989_s3  ;;  %s762_s21 = smul.f32 0.00390625, %s1022_s28 }
 0x30f   : > { %s1024_s7 = spop %1023 }
 0x310   : > { %761 = sst [smem:[#allocation2 + $0x2]] %s759_s12  ;;  %v763_v8 = vstv %s762_s21 }
 0x311   : > { %vm764_vm14 = vcmp.le.f32.partialorder %v1581_v36, %v763_v8  ;;  %vm765_vm15 = vcmp.le.f32.partialorder %v708_v41, %v763_v8  ;;  %s751_s24 = sadd.f32 %s1024_s7, %s750_s9 }
 0x312   : > { %v990_v12 = vsel %vm764_vm14, 1.0, %v1344_v11  ;;  %v991_v13 = vsel %vm765_vm15, 1.0, %v1344_v11  ;;  %s995_s27 = sld [smem:[#allocation2 + $0x2]] (!%p993_p1) }
 0x313   : > { %v774_v14 = vsub.f32 1.0, %v990_v12  ;;  %v775_v15 = vsub.f32 1.0, %v991_v13  ;;  %753 = sst [smem:[#allocation2]] %s751_s24  ;;  %v772_v16 = vmul.f32 %v990_v12, %v770_v9  ;;  %v773_v18 = vmul.f32 %v991_v13, %v771_v10 }
 0x314   : > { %s800_s13 = sld [smem:[#allocation2]] (!%p993_p1) }
 0x315   : > { %v776_v17 = vmul.f32 %v774_v14, %v1572_v4  ;;  %v777_v19 = vmul.f32 %v775_v15, %v1575_v5 }
 0x317   : > { %v778_v20 = vadd.f32 %v776_v17, %v772_v16  ;;  %v779_v21 = vadd.f32 %v777_v19, %v773_v18 }
 0x319   : > { %v781_v22 = vsel %vm711_vm7, %v778_v20, 0.0  ;;  %v782_v23 = vsel %vm711_vm7, %v779_v21, 0.0 }
 0x31a   : > { %v783_v24 = vadd.f32 %v782_v23, %v781_v22  ;;  %s821_s23 = ssub.f32 (!%p993_p1), %s995_s27, %s800_s13 }
 0x31c   : > { %784 = vadd.xlane.f32.xlu1 %v783_v24 }
 0x38f   : > { %v785_v25 = vpop.xlane.xlu1 %784 }
 0x390   : > { %v786_v26 = vrot.slane %v785_v25, 4 }
 0x392   : > { %v787_v27 = vadd.f32 %v786_v26, %v785_v25 }
 0x394   : > { %v788_v28 = vrot.slane %v787_v27, 2 }
 0x396   : > { %v789_v29 = vadd.f32 %v788_v28, %v787_v27 }
 0x398   : > { %v790_v30 = vrot.slane %v789_v29, 1 }
 0x39a   : > { %v791_v31 = vadd.f32 %v790_v30, %v789_v29 }
 0x39c   : > { %1025 = vpush %v791_v31 }
 0x3cc   : > { %799 = sbr.rel (%p993_p1) target bundleno = 1055 (0x41f), region = 68 }
 0x3cd   : > { %s1026_s10 = spop %1025 }
 0x3ce   : > { %s793_s16 = sadd.f32 %s1026_s10, %s992_s8 }
 0x3d0   : > { %795 = sst [smem:[#allocation2 + $0x3]] %s793_s16 }
 0x3d1   : > { %v803_v4 = vstv %s802_s15  ;;  %v824_v5 = vstv %s823_s29  ;;  %s996_s25 = sld [smem:[#allocation2 + $0x3]] }
 0x3d2   : > { %1123 = vrcp.f32 %v803_v4  ;;  %vm809_vm0 = vweird.f32 %v803_v4  ;;  %v815_v35 = vand.u32 2147483648, %v803_v4  ;;  %v813_v37 = vand.u32 2147483647, %v803_v4 }
 0x3d3   : > { %1125 = vrcp.f32 %v824_v5  ;;  %vm830_vm2 = vweird.f32 %v824_v5  ;;  %v836_v39 = vand.u32 2147483648, %v824_v5  ;;  %v834_v42 = vand.u32 2147483647, %v824_v5 }
 0x3d4   : > { %v816_v43 = vor.u32 1.1754944e-38, %v815_v35  ;;  %vm814_vm5 = vcmp.eq.f32.partialorder %v813_v37, 8.507059e+37 }
 0x3d5   : > { %v837_v46 = vor.u32 1.1754944e-38, %v836_v39  ;;  %vm835_vm7 = vcmp.eq.f32.partialorder %v834_v42, 8.507059e+37 }
 0x3d7   : > { %s842_s9 = smul.f32 0.5, %s996_s25 }
 0x3d8   : > { %v1124_v32 = vpop.eup %1123 }
 0x3d9   : > { %v805_v33 = vmul.f32 %v1124_v32, %v803_v4  ;;  %v1126_v34 = vpop.eup %1125  ;;  %vm810_vm1 = vweird.f32 %v1124_v32 }
 0x3da   : > { %v826_v38 = vmul.f32 %v1126_v34, %v824_v5  ;;  %vm831_vm3 = vweird.f32 %v1126_v34  ;;  %vm811_vm4 = vmor %vm809_vm0, %vm810_vm1 }
 0x3db   : > { %v806_v36 = vsub.f32 1.0, %v805_v33  ;;  %vm832_vm6 = vmor %vm830_vm2, %vm831_vm3 }
 0x3dc   : > { %v827_v41 = vsub.f32 1.0, %v826_v38 }
 0x3dd   : > { %v807_v40 = vmul.f32 %v1124_v32, %v806_v36 }
 0x3de   : > { %v828_v45 = vmul.f32 %v1126_v34, %v827_v41 }
 0x3df   : > { %v808_v44 = vadd.f32 %v1124_v32, %v807_v40 }
 0x3e0   : > { %v829_v48 = vadd.f32 %v1126_v34, %v828_v45 }
 0x3e1   : > { %v812_v47 = vsel %vm811_vm4, %v1124_v32, %v808_v44 }
 0x3e2   : > { %v817_v49 = vsel %vm814_vm5, %v816_v43, %v812_v47  ;;  %v833_v50 = vsel %vm832_vm6, %v1126_v34, %v829_v48 }
 0x3e3   : > { %1027 = vpush %v817_v49  ;;  %v838_v51 = vsel %vm835_vm7, %v837_v46, %v833_v50 }
 0x3e4   : > { %1029 = vpush %v838_v51 }
 0x414   : > { %s1028_s30 = spop %1027 }
 0x415   : > { %s819_s26 = smul.f32 %s1028_s30, %s800_s13  ;;  %s1030_s14 = spop %1029 }
 0x416   : > { %s840_s3 = smul.f32 %s1030_s14, %s821_s23 }
 0x418   : > { %s843_s28 = ssub.f32 %s819_s26, %s840_s3 }
 0x41a   : > { %s844_s12 = smul.f32 0.1, %s843_s28 }
 0x41c   : > { %s845_s21 = sadd.f32 %s844_s12, %s842_s9 }
 0x41e   : > { %847 = sst [smem:[#allocation12]] %s845_s21 }
 0x41f PF: > { %p1077_p4 = scmp.eq.s32.totalorder %s1396_s22, 1  ;;  %s854_s8 = sshll.u32 %s1629_s5, 4  ;;  %s855_s8 = int_to_ptr.hbm [resolvable:$true] %s854_s8 }
 0x420   : > { %s1346_s10 = smov [#allocation12]  }
 0x421   : > { %1051 = dma.smem_to_hbm (%p1077_p4), %s1346_s10, 16, %s855_s8, [#allocation5]  }
 0x422   : > { %1320 = dma.done.wait (%p1077_p4), [#allocation5], 16  }
 0x423   : > { %1322 = vsyncadd (%p1077_p4), [#allocation5], 4294967280 }
 0x424   : > { %863 = sfence }
 0x425 PF: > { %p20_p5 = scmp.ge.s32.totalorder %s1424_s6, 4   ;;  %s1643_s18 = smov %s1329_s19 }
 0x426   : > { %s1644_s19 = smov %s1333_s20  ;;  %s1645_s20 = smov %s1439_s11 }
 0x427   : > { %s1646_s21 = smov %s1424_s6  ;;  %22 = sbr.rel (!%p20_p5) target bundleno = 10 (0xa), region = 126 }
 0x42c   :  { %869 = vsyncpa [#allocation4], 1 }
 0x42d   :  { %871 = vsyncpa [#allocation4 + $0x1], 1 }
 0x42e   :  { %872 = vsyncpa [#allocation7], 1 }
 0x42f   :  { %874 = vsyncpa [#allocation7 + $0x1], 1 }
 0x430   :  { %875 = vsyncpa [#allocation10], 1 }
 0x431   :  { %876 = vsyncpa [#allocation5], 1 }
 0x432   :  { %878 = vsyncpa [#allocation5 + $0x1], 1 }

</bundles_post_ra>
